<compile_context>
chip_gen: v7x
topology: tpu7x:2x2x1
jax: 0.10.0
libtpu: 0.0.40
codegen_flags: <defaults>
</compile_context>

<pallas_src>
import functools

import jax
import jax.numpy as jnp
import numpy as np
from jax.experimental import pallas as pl
from jax.experimental.pallas import tpu as pltpu


# --------------------------------------------------------------------------- #
# Kernels
# --------------------------------------------------------------------------- #
def _masked_readout_kernel(inv_ref, seq_ref, msk_ref, out_ref, acc_ref):
    """out = sum_n(seq * msk) * (1 / sum(whole mask))   (torch semantics).

    inv_ref : (1, 1) f32 SMEM  -- reciprocal of the GLOBAL mask sum
    seq_ref : (Bt, Nt, D) VMEM
    msk_ref : (Bt, Nt, 1) VMEM -- lane-broadcast against seq
    out_ref : (Bt, D)  VMEM    -- same block across the N axis (resident)
    acc_ref : (Bt, D)  f32 VMEM scratch, persists across the N (reduction) axis
    """
    n = pl.program_id(1)

    @pl.when(n == 0)
    def _():
        acc_ref[...] = jnp.zeros_like(acc_ref)

    prod = seq_ref[...] * msk_ref[...]                        # pure lane broadcast
    acc_ref[...] += jnp.sum(prod.astype(jnp.float32), axis=1)  # f32 accumulate

    @pl.when(n == pl.num_programs(1) - 1)
    def _():
        out_ref[...] = (acc_ref[...] * inv_ref[0, 0]).astype(out_ref.dtype)


def _mean_readout_kernel(seq_ref, out_ref, acc_ref, *, inv_n):
    """msk=None path: plain mean over the node axis (dim 1)."""
    n = pl.program_id(1)

    @pl.when(n == 0)
    def _():
        acc_ref[...] = jnp.zeros_like(acc_ref)

    acc_ref[...] += jnp.sum(seq_ref[...].astype(jnp.float32), axis=1)

    @pl.when(n == pl.num_programs(1) - 1)
    def _():
        out_ref[...] = (acc_ref[...] * inv_n).astype(out_ref.dtype)


# --------------------------------------------------------------------------- #
# Tile selection (conservative across v5e / v6e / v7x VMEM budgets)
# --------------------------------------------------------------------------- #
_VMEM_BUDGET_BYTES = 8 * 1024 * 1024   # fits v5e's 16 MiB scoped default with headroom


def _pick_b_tile(B, cap=8):
    """Largest divisor of B <= cap that keeps the (Bt, D) output block legal
    (Bt a multiple of 8, or the full B)."""
    cap = max(1, min(B, cap))
    for d in range(cap, 0, -1):
        if B % d == 0 and (d % 8 == 0 or d == B):
            return d
    return B


def _pick_n_tile(N, Bt, D, seq_itemsize, masked):
    """Largest legal N tile that keeps double-buffered tiles under the budget."""
    per_row = Bt * D * seq_itemsize * 2            # seq tile, double-buffered
    if masked:
        per_row += Bt * 128 * 4 * 2                # (Bt, Nt, 1) f32 mask pads to 128 lanes
    cap = max(8, _VMEM_BUDGET_BYTES // per_row)
    cap = max(1, min(N, cap))
    for d in range(cap, 0, -1):
        # seq block is (Bt, Nt, D): Nt must be a multiple of 8 (sublane) or full N.
        if N % d == 0 and (d % 8 == 0 or d == N):
            return d
    return N


# --------------------------------------------------------------------------- #
# Wrapper
# --------------------------------------------------------------------------- #
def avg_readout(seq, msk=None, *, n_tile=None):
    """Pallas TPU implementation of AvgReadout.forward(seq, msk)."""
    B, N, D = seq.shape
    itemsize = jnp.dtype(seq.dtype).itemsize
    out_shape = jax.ShapeDtypeStruct((B, D), seq.dtype)

    Bt = _pick_b_tile(B)
    if n_tile is not None:
        assert N % n_tile == 0 and (n_tile % 8 == 0 or n_tile == N)
        Nt = n_tile
    else:
        Nt = _pick_n_tile(N, Bt, D, itemsize, masked=msk is not None)
    grid = (B // Bt, N // Nt)

    compiler_params = pltpu.CompilerParams(
        dimension_semantics=("parallel", "arbitrary"))

    if msk is None:
        kernel = functools.partial(_mean_readout_kernel, inv_n=1.0 / float(N))
        cost = pl.CostEstimate(
            flops=2 * B * N * D,
            transcendentals=0,
            bytes_accessed=B * N * D * itemsize + B * D * itemsize)
        return pl.pallas_call(
            kernel,
            out_shape=out_shape,
            grid_spec=pltpu.PrefetchScalarGridSpec(
                num_scalar_prefetch=0,
                grid=grid,
                in_specs=[pl.BlockSpec((Bt, Nt, D), lambda b, n: (b, n, 0))],
                out_specs=pl.BlockSpec((Bt, D), lambda b, n: (b, 0)),
                scratch_shapes=[pltpu.VMEM((Bt, D), jnp.float32)]),
            compiler_params=compiler_params,
            cost_estimate=cost,
        )(seq)

    # Denominator is the sum of the WHOLE mask (all batches) -- torch semantics.
    # Hoisted to the wrapper so tiling / megacore sharding stays correct; passed
    # as a reciprocal so the in-kernel finalize is a single multiply.
    # (sum(msk) == 0 still yields Inf/NaN, exactly like the torch code.)
    inv = (1.0 / jnp.sum(msk.astype(jnp.float32))).reshape(1, 1)
    # (B, N, 1) layout: in-kernel multiply is a pure lane broadcast, no relayout.
    msk3 = msk.astype(jnp.float32).reshape(B, N, 1)

    cost = pl.CostEstimate(
        flops=2 * B * N * D,
        transcendentals=0,
        bytes_accessed=B * N * D * itemsize + B * N * 4 + B * D * itemsize)

    return pl.pallas_call(
        _masked_readout_kernel,
        out_shape=out_shape,
        grid_spec=pltpu.PrefetchScalarGridSpec(
            num_scalar_prefetch=0,
            grid=grid,
            in_specs=[
                pl.BlockSpec(memory_space=pltpu.MemorySpace.SMEM),    # inv (1,1) scalar
                pl.BlockSpec((Bt, Nt, D), lambda b, n: (b, n, 0)),    # seq tile
                pl.BlockSpec((Bt, Nt, 1), lambda b, n: (b, n, 0)),    # mask tile
            ],
            out_specs=pl.BlockSpec((Bt, D), lambda b, n: (b, 0)),
            scratch_shapes=[pltpu.VMEM((Bt, D), jnp.float32)]),
        compiler_params=compiler_params,
        cost_estimate=cost,
    )(inv, seq, msk3)


def avg_readout_reference(seq, msk=None):
    if msk is None:
        return jnp.mean(seq, axis=1)
    m = msk[..., None]
    return jnp.sum(seq * m, axis=1) / jnp.sum(msk)


if __name__ == "__main__":
    # Small shapes consistent with the module: batch=2, nodes=8, hidden=128
    # (hidden kept at 128 so every block is lane-dense).
    B, N, D = 2, 8, 128

    key = jax.random.PRNGKey(0)
    k_seq, k_msk, k_seq2, k_msk2 = jax.random.split(key, 4)

    seq = jax.random.normal(k_seq, (B, N, D), dtype=jnp.float32)
    msk = (jax.random.uniform(k_msk, (B, N)) > 0.3).astype(jnp.float32)
    msk = msk.at[:, 0].set(1.0)  # guarantee sum(msk) > 0

    # Masked path
    out_masked = jax.block_until_ready(avg_readout(seq, msk))
    np.testing.assert_allclose(np.asarray(out_masked),
                               np.asarray(avg_readout_reference(seq, msk)),
                               rtol=1e-5, atol=1e-5)

    # msk=None path (plain mean over dim 1)
    out_mean = jax.block_until_ready(avg_readout(seq, None))
    np.testing.assert_allclose(np.asarray(out_mean),
                               np.asarray(avg_readout_reference(seq, None)),
                               rtol=1e-5, atol=1e-5)

    # Multi-tile check: several grid steps along the N (reduction) axis so the
    # resident-accumulator init / accumulate / finalize path is exercised.
    B2, N2, D2 = 2, 32, 128
    seq2 = jax.random.normal(k_seq2, (B2, N2, D2), dtype=jnp.float32)
    msk2 = (jax.random.uniform(k_msk2, (B2, N2)) > 0.5).astype(jnp.float32)
    msk2 = msk2.at[:, 0].set(1.0)

    out2 = jax.block_until_ready(avg_readout(seq2, msk2, n_tile=8))
    np.testing.assert_allclose(np.asarray(out2),
                               np.asarray(avg_readout_reference(seq2, msk2)),
                               rtol=1e-5, atol=1e-5)

    out2m = jax.block_until_ready(avg_readout(seq2, None, n_tile=8))
    np.testing.assert_allclose(np.asarray(out2m),
                               np.asarray(avg_readout_reference(seq2, None)),
                               rtol=1e-5, atol=1e-5)

    print("KERNEL_OK")
</pallas_src>

<mosaic_0001>
module attributes {stable_mosaic.version = 11 : i64} {
  func.func @_masked_readout_kernel(%arg0: i32, %arg1: i32, %arg2: memref<1x1xf32, #tpu.memory_space<smem>>, %arg3: memref<2x8x128xf32, #tpu.memory_space<vmem>>, %arg4: memref<2x8x1xf32, #tpu.memory_space<vmem>>, %arg5: memref<2x128xf32, #tpu.memory_space<vmem>>, %arg6: memref<2x128xf32, #tpu.memory_space<vmem>>) attributes {dimension_semantics = [#tpu.dimension_semantics<parallel>, #tpu.dimension_semantics<arbitrary>], iteration_bounds = array<i64: 1, 1>, scalar_prefetch = 0 : i64, scratch_operands = 1 : i64, tpu.core_type = #tpu.core_type<tc>, window_params = [{transform_indices = @transform_0, window_bounds = array<i64: 1, 1>}, {transform_indices = @transform_1, window_bounds = array<i64: 2, 8, 128>}, {transform_indices = @transform_2, window_bounds = array<i64: 2, 8, 1>}, {transform_indices = @transform_3, window_bounds = array<i64: 2, 128>}]} {
    %c0_i32 = arith.constant 0 : i32
    %0 = arith.cmpi eq, %arg1, %c0_i32 : i32
    %1 = arith.extui %0 : i1 to i32
    %c0_i32_0 = arith.constant 0 : i32
    %2 = arith.cmpi ne, %1, %c0_i32_0 : i32
    scf.if %2 {
      %cst_12 = arith.constant 0.000000e+00 : f32
      %14 = vector.broadcast %cst_12 : f32 to vector<2x128xf32>
      %c0_13 = arith.constant 0 : index
      %c0_14 = arith.constant 0 : index
      %15 = vector.load %arg6[%c0_13, %c0_14] : memref<2x128xf32, #tpu.memory_space<vmem>>, vector<2x128xf32>
      tpu.vector_store %arg6[%c0_13, %c0_14], %14 {strides = array<i32>} : memref<2x128xf32, #tpu.memory_space<vmem>>, vector<2x128xf32>,
    } else {
    }
    %c0 = arith.constant 0 : index
    %c0_1 = arith.constant 0 : index
    %c0_2 = arith.constant 0 : index
    %3 = vector.load %arg3[%c0, %c0_1, %c0_2] : memref<2x8x128xf32, #tpu.memory_space<vmem>>, vector<2x8x128xf32>
    %c0_3 = arith.constant 0 : index
    %c0_4 = arith.constant 0 : index
    %c0_5 = arith.constant 0 : index
    %4 = vector.load %arg4[%c0_3, %c0_4, %c0_5] : memref<2x8x1xf32, #tpu.memory_space<vmem>>, vector<2x8x1xf32>
    %5 = vector.broadcast %4 : vector<2x8x1xf32> to vector<2x8x128xf32>
    %6 = arith.mulf %3, %5 : vector<2x8x128xf32>
    %c0_6 = arith.constant 0 : index
    %c0_7 = arith.constant 0 : index
    %7 = vector.load %arg6[%c0_6, %c0_7] : memref<2x128xf32, #tpu.memory_space<vmem>>, vector<2x128xf32>
    %cst = arith.constant dense<0.000000e+00> : vector<2x128xf32>
    %8 = vector.multi_reduction <add>, %6, %cst [1] : vector<2x8x128xf32> to vector<2x128xf32>
    %9 = arith.addf %7, %8 : vector<2x128xf32>
    %c0_8 = arith.constant 0 : index
    %c0_9 = arith.constant 0 : index
    %10 = vector.load %arg6[%c0_8, %c0_9] : memref<2x128xf32, #tpu.memory_space<vmem>>, vector<2x128xf32>
    tpu.vector_store %arg6[%c0_8, %c0_9], %9 {strides = array<i32>} : memref<2x128xf32, #tpu.memory_space<vmem>>, vector<2x128xf32>,
    %c0_i32_10 = arith.constant 0 : i32
    %11 = arith.cmpi eq, %arg1, %c0_i32_10 : i32
    %12 = arith.extui %11 : i1 to i32
    %c0_i32_11 = arith.constant 0 : i32
    %13 = arith.cmpi ne, %12, %c0_i32_11 : i32
    scf.if %13 {
      %c0_12 = arith.constant 0 : index
      %c0_13 = arith.constant 0 : index
      %14 = vector.load %arg6[%c0_12, %c0_13] : memref<2x128xf32, #tpu.memory_space<vmem>>, vector<2x128xf32>
      %c0_14 = arith.constant 0 : index
      %c0_15 = arith.constant 0 : index
      %15 = memref.load %arg2[%c0_14, %c0_15] : memref<1x1xf32, #tpu.memory_space<smem>>
      %16 = vector.broadcast %15 : f32 to vector<2x128xf32>
      %17 = arith.mulf %14, %16 : vector<2x128xf32>
      %c0_16 = arith.constant 0 : index
      %c0_17 = arith.constant 0 : index
      %18 = vector.load %arg5[%c0_16, %c0_17] : memref<2x128xf32, #tpu.memory_space<vmem>>, vector<2x128xf32>
      tpu.vector_store %arg5[%c0_16, %c0_17], %17 {strides = array<i32>} : memref<2x128xf32, #tpu.memory_space<vmem>>, vector<2x128xf32>,
    } else {
    }
    return
  }
  func.func @transform_0(%arg0: i32, %arg1: i32) -> (i32, i32) {
    %c0_i32 = arith.constant 0 : i32
    %c0_i32_0 = arith.constant 0 : i32
    %c0_i32_1 = arith.constant 0 : i32
    return %c0_i32, %c0_i32_0 : i32, i32
  }
  func.func @transform_1(%arg0: i32, %arg1: i32) -> (i32, i32, i32) {
    %c0_i32 = arith.constant 0 : i32
    %c0_i32_0 = arith.constant 0 : i32
    return %arg0, %arg1, %c0_i32 : i32, i32, i32
  }
  func.func @transform_2(%arg0: i32, %arg1: i32) -> (i32, i32, i32) {
    %c0_i32 = arith.constant 0 : i32
    %c0_i32_0 = arith.constant 0 : i32
    return %arg0, %arg1, %c0_i32 : i32, i32, i32
  }
  func.func @transform_3(%arg0: i32, %arg1: i32) -> (i32, i32) {
    %c0_i32 = arith.constant 0 : i32
    %c0_i32_0 = arith.constant 0 : i32
    return %arg0, %c0_i32 : i32, i32
  }
}

</mosaic_0001>

<bundles_post_ra>
// kernel: tpu_custom_call.1
= control target key start
LH: loop header
LB: loop body
LE: loop exit
PB: predicated region body
PF: predicated region fallthrough
CT: control target
= control target key end

     0   :  { %s157_s0 = inlined_call_operand.<no memory space> [shape: f32[1,1], index: 0, kind: input, shape index: {}]   ;;  %s158_s1 = inlined_call_operand.vmem [shape: f32[2,8,128], index: 1, kind: input, shape index: {}]   ;;  %s159_s2 = inlined_call_operand.vmem [shape: f32[2,8,1], index: 2, kind: input, shape index: {}]   ;;  %s160_s3 = inlined_call_operand.hbm [shape: f32[2,128], index: 3, kind: output, shape index: {}]  }
   0x1   :  { %v23_v0 = vld [vmem:[%s159_s2] sm:$0xff] }
   0x2   :  { %9 = vsyncpa [#allocation5], 0  ;;  %v107_v1 = vmov 0   ;;  %v24_v2 = vld [vmem:[%s159_s2 + $0x8] sm:$0xff]  ;;  %v108_v3 = vmov 0.0   ;;  %v21_v4 = vld [vmem:[%s158_s1] sm:$0xff]  ;;  %v62_v25 = vstv %s157_s0 }
   0x3   :  { %82 = vset.pattern.permute.xlu0 %v107_v1  ;;  %20 = vst [vmem:[#allocation2] sm:$0x3] %v108_v3  ;;  %v22_v7 = vld [vmem:[%s158_s1 + $0x8] sm:$0xff]  ;;  %vm52_vm0 = vcmask 1041409   ;;  %s109_s20 = smov [#allocation4]  }
   0x4   :  { %27 = vperm.xlu0 %82, %v23_v0   ;;  %s71_s21 = sshll.u32 %s109_s20, 4  ;;  %s72_s21 = int_to_ptr.vmem [resolvable:$true] %s71_s21 }
   0x5   :  { %s83_s22 = scalar_lea.vmem %s72_s21, 32  ;;  %p88_p1 = scmp.lt.s32.totalorder %s72_s21, %s72_s21 }
   0x6   :  { %p84_p0 = scmp.ne.s32.totalorder %s72_s21, %s83_s22  ;;  %p89_p2 = scmp.lt.s32.totalorder %s83_s22, %s83_s22 }
   0x8   :  { %32 = vperm.xlu0 %82, %v24_v2   ;;  %p90_p3 = por %p89_p2, %p88_p1 }
   0xa   :  { %v37_v21 = vld [vmem:[#allocation2] sm:$0x3]  ;;  %p91_p4 = pnand %p90_p3, %p84_p0 }
  0x83   :  { %v28_v5 = vpop.permute.xlu0 %27 }
  0x84   :  { %v35_v6 = vmul.f32 %v28_v5, %v21_v4 }
  0x86   :  { %v38_v8 = vrot.slane %v35_v6, 4 }
  0x87   :  { %v33_v9 = vpop.permute.xlu0 %32 }
  0x88   :  { %v39_v10 = vadd.f32 %v38_v8, %v35_v6  ;;  %v36_v11 = vmul.f32 %v33_v9, %v22_v7 }
  0x8a   :  { %v40_v12 = vrot.slane %v39_v10, 2  ;;  %v44_v13 = vrot.slane %v36_v11, 4 }
  0x8c   :  { %v41_v14 = vadd.f32 %v40_v12, %v39_v10  ;;  %v45_v15 = vadd.f32 %v44_v13, %v36_v11 }
  0x8e   :  { %v46_v16 = vrot.slane %v45_v15, 2  ;;  %v42_v17 = vrot.slane %v41_v14, 1 }
  0x90   :  { %v47_v18 = vadd.f32 %v46_v16, %v45_v15  ;;  %v43_v20 = vadd.f32 %v42_v17, %v41_v14 }
  0x92   :  { %v48_v19 = vrot.slane %v47_v18, 1 }
  0x94   :  { %v49_v22 = vadd.f32 %v48_v19, %v47_v18 }
  0x96   :  { %v53_v23 = vsel %vm52_vm0, %v49_v22, %v43_v20 }
  0x97   :  { %v55_v24 = vadd.f32 %v53_v23, %v37_v21 }
  0x99   :  { %56 = vst [vmem:[#allocation2] sm:$0x3] %v55_v24 }
  0xa0   :  { %v60_v26 = vld [vmem:[#allocation2] sm:$0x3] }
  0xa1   :  { %v63_v27 = vmul.f32 %v62_v25, %v60_v26 }
  0xa3   :  { %64 = vst [vmem:[#allocation4] sm:$0x3] %v63_v27 }
  0xa4   :  { %94 = shalt.err (!%p91_p4)
}
  0xa5   :  { %s95_s25 = scalar_lea.hbm %s160_s3, 32 }
  0xa6   :  { %p96_p5 = scmp.ne.s32.totalorder %s160_s3, %s95_s25  ;;  %p99_p6 = scmp.lt.u32.totalorder %s95_s25, %s160_s3 }
  0xa8   :  { %p101_p7 = pnand %p99_p6, %p96_p5 }
  0xaa   :  { %104 = shalt.err (!%p101_p7)
}
  0xab   :  { %74 = dma.vmem_to_hbm [thread:$0]  %s72_s21, 32, %s160_s3, [#allocation5]  }
  0xac   :  { %105 = dma.done.wait [#allocation5], 32  }
  0xad   :  { %106 = vsyncadd [#allocation5], 4294967264 }
  0xae   :  { %78 = vsyncpa [#allocation5], 1 }

</bundles_post_ra>
